<compile_context>
chip_gen: v7x
topology: tpu7x:2x2x1
jax: 0.10.0
libtpu: 0.0.40
codegen_flags: <defaults>
</compile_context>

<pallas_src>
import jax
import jax.numpy as jnp
from jax import lax
from jax.experimental import pallas as pl
from jax.experimental.pallas import tpu as pltpu
import numpy as np

# ----- static model dimensions (small, consistent with a tiny board game) ---
B = 2                  # batch
H = W = 4              # board spatial size
HWN = H * W            # positions per board (16)
CIN = 2                # encoded planes (+1 stones, -1 stones)
CHID = 8               # conv hidden channels
A = H * W              # number of actions (policy logits)
FEAT = H * W * CHID    # flattened feature dim per sample (= 128)
ENC_DIM = CIN * HWN    # flattened one-hot encoding dim (= 32)

# ----- packed-parameter slab layout (rows aligned to multiples of 8) --------
SLAB_COLS = FEAT                      # 128 lanes (>= A + 1)
W1_ROW0 = 0                           # rows [0, 32): fused conv weight
B1_ROW = ENC_DIM                      # row 32: conv bias (tiled over positions)
W2_ROW0 = B1_ROW + 8                  # rows [40, 168): fused policy|value head
B2_ROW = W2_ROW0 + FEAT               # row 168: fused head bias
SLAB_ROWS = B2_ROW + 8                # 176 rows total

assert SLAB_COLS >= A + 1

# im2col selection tensor (constant, built once at import time):
# SEL[j, q, k] = 1  iff flattened-planar-encoding index j feeds im2col patch
# entry k of output position q, with k = (kh*3 + kw)*CIN + cin and
# j = cin*H*W + ih*W + iw (ih = qh + kh - 1, iw = qw + kw - 1, in-bounds).
_SEL = np.zeros((ENC_DIM, HWN, 9 * CIN), np.float32)
for _qh in range(H):
    for _qw in range(W):
        _q = _qh * W + _qw
        for _kh in range(3):
            for _kw in range(3):
                _ih, _iw = _qh + _kh - 1, _qw + _kw - 1
                if 0 <= _ih < H and 0 <= _iw < W:
                    for _c in range(CIN):
                        _j = _c * HWN + _ih * W + _iw
                        _k = (_kh * 3 + _kw) * CIN + _c
                        _SEL[_j, _q, _k] = 1.0


# ---------------------------- Pallas kernel ---------------------------------
def _core_kernel(state_ref, params_ref, out_ref):
    # ----- game.encode fused in-kernel: one-hot planes from int board -------
    s = state_ref[...]                              # (B, H*W) int32
    plus = (s == 1).astype(jnp.float32)             # (B, 16)
    minus = (s == -1).astype(jnp.float32)           # (B, 16)

    # ----- conv3x3 + bias + ReLU as a single fused matmul --------------------
    # (im2col + conv weight were folded into W1 at pack time; planar layout
    #  lets us use the two planes directly -> no in-kernel concat/relayout)
    w1_plus = params_ref[W1_ROW0:W1_ROW0 + HWN, :]          # (16, FEAT)
    w1_minus = params_ref[W1_ROW0 + HWN:W1_ROW0 + ENC_DIM, :]
    b1 = params_ref[B1_ROW:B1_ROW + 1, :]                   # (1, FEAT)
    feat = jnp.maximum(
        jnp.dot(plus, w1_plus, preferred_element_type=jnp.float32)
        + jnp.dot(minus, w1_minus, preferred_element_type=jnp.float32)
        + b1,
        0.0)                                                # (B, FEAT)

    # ----- fused policy|value head (lane-dense, padded to 128 columns) -------
    w2 = params_ref[W2_ROW0:W2_ROW0 + FEAT, :]              # (FEAT, 128)
    b2 = params_ref[B2_ROW:B2_ROW + 1, :]                   # (1, 128)
    heads = jnp.dot(feat, w2, preferred_element_type=jnp.float32) + b2

    # tanh only on the value column (index A); policy logits pass through.
    col = lax.broadcasted_iota(jnp.int32, heads.shape, 1)
    out_ref[...] = jnp.where(col == A, jnp.tanh(heads), heads)


# ------------------------- parameter packing (once) --------------------------
def pack_params(params):
    """Fold im2col into the conv weight and pack everything into one slab."""
    wconv, bconv, wpol, bpol, wval, bval = params
    # fused conv weight: W1[j, q*CHID + c] = sum_k SEL[j,q,k] * wconv[k, c]
    w1 = jnp.einsum('jqk,kc->jqc', jnp.asarray(_SEL), wconv)
    w1 = w1.reshape(ENC_DIM, FEAT)                           # (32, 128)
    b1 = jnp.tile(bconv.reshape(1, CHID), (1, HWN))          # (1, 128)

    # fused policy|value head, zero-padded to lane-dense width
    w2 = jnp.concatenate([wpol, wval], axis=1)               # (FEAT, A+1)
    b2 = jnp.concatenate([bpol, bval], axis=1)               # (1, A+1)
    w2 = jnp.pad(w2, ((0, 0), (0, SLAB_COLS - (A + 1))))
    b2 = jnp.pad(b2, ((0, 0), (0, SLAB_COLS - (A + 1))))

    slab = jnp.zeros((SLAB_ROWS, SLAB_COLS), jnp.float32)
    slab = slab.at[W1_ROW0:W1_ROW0 + ENC_DIM, :].set(w1)
    slab = slab.at[B1_ROW, :].set(b1[0])
    slab = slab.at[W2_ROW0:W2_ROW0 + FEAT, :].set(w2)
    slab = slab.at[B2_ROW, :].set(b2[0])
    return slab


# ------------------------------- forward -------------------------------------
@jax.jit
def model_forward(state, packed_params):
    """Equivalent of Model.forward: returns (policy_logits, state_value)."""
    state_flat = state.reshape(B, HWN).astype(jnp.int32)     # contiguous, free
    vmem = pl.BlockSpec(memory_space=pltpu.MemorySpace.VMEM)
    out = pl.pallas_call(
        _core_kernel,
        out_shape=jax.ShapeDtypeStruct((B, SLAB_COLS), jnp.float32),
        in_specs=[vmem, vmem],
        out_specs=vmem,
    )(state_flat, packed_params)
    policy = out[:, :A]                                      # (B, A)
    value = out[:, A:A + 1]                                  # (B, 1), tanh'd
    return policy, value


# ------------------------- deterministic params ------------------------------
def init_params(key):
    k1, k2, k3 = jax.random.split(key, 3)
    wconv = jax.random.normal(k1, (CIN * 9, CHID), jnp.float32) * 0.2
    bconv = jnp.full((1, CHID), 0.05, jnp.float32)
    wpol = jax.random.normal(k2, (FEAT, A), jnp.float32) * 0.1
    bpol = jnp.zeros((1, A), jnp.float32)
    wval = jax.random.normal(k3, (FEAT, 1), jnp.float32) * 0.1
    bval = jnp.zeros((1, 1), jnp.float32)
    return wconv, bconv, wpol, bpol, wval, bval


# ------------------------- pure-JAX reference --------------------------------
def game_encode(state):
    """game.encode: int board -> two one-hot float planes (NHWC)."""
    return jnp.stack([(state == 1), (state == -1)], axis=-1).astype(jnp.float32)


def reference_forward(state, params):
    wconv, bconv, wpol, bpol, wval, bval = params
    x = game_encode(state)
    w_hwio = wconv.reshape(3, 3, CIN, CHID)
    conv = lax.conv_general_dilated(
        x, w_hwio, (1, 1), 'SAME',
        dimension_numbers=('NHWC', 'HWIO', 'NHWC')) + bconv.reshape(1, 1, 1, CHID)
    conv = jnp.maximum(conv, 0.0)
    feat = conv.reshape(B, FEAT)
    policy = feat @ wpol + bpol
    value = jnp.tanh(feat @ wval + bval)
    return policy, value


if __name__ == "__main__":
    key = jax.random.PRNGKey(0)
    kp, ks = jax.random.split(key)
    params = init_params(kp)
    packed = pack_params(params)          # built once, outside the hot path

    # deterministic example board states with values in {-1, 0, +1}
    state = jax.random.randint(ks, (B, H, W), minval=-1, maxval=2, dtype=jnp.int32)

    policy, value = model_forward(state, packed)
    jax.block_until_ready((policy, value))

    pol_ref, val_ref = reference_forward(state, params)
    np.testing.assert_allclose(np.asarray(policy), np.asarray(pol_ref),
                               rtol=1e-5, atol=1e-5)
    np.testing.assert_allclose(np.asarray(value), np.asarray(val_ref),
                               rtol=1e-5, atol=1e-5)

    assert policy.shape == (B, A) and value.shape == (B, 1)
    print("KERNEL_OK")
</pallas_src>

<mosaic_0001>
module attributes {stable_mosaic.version = 11 : i64} {
  func.func @_core_kernel(%arg0: memref<2x16xi32, #tpu.memory_space<vmem>>, %arg1: memref<176x128xf32, #tpu.memory_space<vmem>>, %arg2: memref<2x128xf32, #tpu.memory_space<vmem>>) attributes {dimension_semantics = [], scalar_prefetch = 0 : i64, scratch_operands = 0 : i64, tpu.core_type = #tpu.core_type<tc>} {
    %c0 = arith.constant 0 : index
    %c0_0 = arith.constant 0 : index
    %0 = vector.load %arg0[%c0, %c0_0] : memref<2x16xi32, #tpu.memory_space<vmem>>, vector<2x16xi32>
    %c1_i32 = arith.constant 1 : i32
    %1 = vector.broadcast %c1_i32 : i32 to vector<2x16xi32>
    %2 = arith.cmpi eq, %0, %1 : vector<2x16xi32>
    %3 = arith.extui %2 : vector<2x16xi1> to vector<2x16xi32>
    %4 = arith.sitofp %3 : vector<2x16xi32> to vector<2x16xf32>
    %c-1_i32 = arith.constant -1 : i32
    %5 = vector.broadcast %c-1_i32 : i32 to vector<2x16xi32>
    %6 = arith.cmpi eq, %0, %5 : vector<2x16xi32>
    %7 = arith.extui %6 : vector<2x16xi1> to vector<2x16xi32>
    %8 = arith.sitofp %7 : vector<2x16xi32> to vector<2x16xf32>
    %c0_1 = arith.constant 0 : index
    %c0_2 = arith.constant 0 : index
    %9 = vector.load %arg1[%c0_1, %c0_2] : memref<176x128xf32, #tpu.memory_space<vmem>>, vector<16x128xf32>
    %c16 = arith.constant 16 : index
    %c0_3 = arith.constant 0 : index
    %10 = vector.load %arg1[%c16, %c0_3] : memref<176x128xf32, #tpu.memory_space<vmem>>, vector<16x128xf32>
    %c32 = arith.constant 32 : index
    %c0_4 = arith.constant 0 : index
    %11 = vector.load %arg1[%c32, %c0_4] : memref<176x128xf32, #tpu.memory_space<vmem>>, vector<1x128xf32>
    %cst = arith.constant dense<0.000000e+00> : vector<2x128xf32>
    %12 = tpu.matmul %4, %9, %cst {dimension_numbers = #tpu.dot_dimension_numbers<[1], [0], [0], [1], [0, 0, 1, 1], [], []>} : vector<2x16xf32>, vector<16x128xf32>, vector<2x128xf32> -> vector<2x128xf32>
    %cst_5 = arith.constant dense<0.000000e+00> : vector<2x128xf32>
    %13 = tpu.matmul %8, %10, %cst_5 {dimension_numbers = #tpu.dot_dimension_numbers<[1], [0], [0], [1], [0, 0, 1, 1], [], []>} : vector<2x16xf32>, vector<16x128xf32>, vector<2x128xf32> -> vector<2x128xf32>
    %14 = arith.addf %12, %13 : vector<2x128xf32>
    %15 = vector.broadcast %11 : vector<1x128xf32> to vector<2x128xf32>
    %16 = arith.addf %14, %15 : vector<2x128xf32>
    %cst_6 = arith.constant 0.000000e+00 : f32
    %17 = vector.broadcast %cst_6 : f32 to vector<2x128xf32>
    %18 = arith.maximumf %16, %17 : vector<2x128xf32>
    %c40 = arith.constant 40 : index
    %c0_7 = arith.constant 0 : index
    %19 = vector.load %arg1[%c40, %c0_7] : memref<176x128xf32, #tpu.memory_space<vmem>>, vector<128x128xf32>
    %c168 = arith.constant 168 : index
    %c0_8 = arith.constant 0 : index
    %20 = vector.load %arg1[%c168, %c0_8] : memref<176x128xf32, #tpu.memory_space<vmem>>, vector<1x128xf32>
    %cst_9 = arith.constant dense<0.000000e+00> : vector<2x128xf32>
    %21 = tpu.matmul %18, %19, %cst_9 {dimension_numbers = #tpu.dot_dimension_numbers<[1], [0], [0], [1], [0, 0, 1, 1], [], []>} : vector<2x128xf32>, vector<128x128xf32>, vector<2x128xf32> -> vector<2x128xf32>
    %22 = vector.broadcast %20 : vector<1x128xf32> to vector<2x128xf32>
    %23 = arith.addf %21, %22 : vector<2x128xf32>
    %24 = tpu.iota {dimensions = array<i32: 1>} : vector<2x128xi32>
    %c16_i32 = arith.constant 16 : i32
    %25 = vector.broadcast %c16_i32 : i32 to vector<2x128xi32>
    %26 = arith.cmpi eq, %24, %25 : vector<2x128xi32>
    %27 = math.tanh %23 : vector<2x128xf32>
    %28 = arith.select %26, %27, %23 : vector<2x128xi1>, vector<2x128xf32>
    %c0_10 = arith.constant 0 : index
    %c0_11 = arith.constant 0 : index
    %29 = vector.load %arg2[%c0_10, %c0_11] : memref<2x128xf32, #tpu.memory_space<vmem>>, vector<2x128xf32>
    tpu.vector_store %arg2[%c0_10, %c0_11], %28 {strides = array<i32>} : memref<2x128xf32, #tpu.memory_space<vmem>>, vector<2x128xf32>,
    return
  }
}

</mosaic_0001>

<bundles_post_ra>
// kernel: model_forward.1
= control target key start
LH: loop header
LB: loop body
LE: loop exit
PB: predicated region body
PF: predicated region fallthrough
CT: control target
= control target key end

     0   :  { %7 = vsyncpa [#allocation3], 0  ;;  %s432_s9 = smov [#allocation2]   ;;  %s476_s0 = inlined_call_operand.vmem [shape: s32[2,16], index: 0, kind: input, shape index: {}]   ;;  %s477_s1 = inlined_call_operand.hbm [shape: f32[176,128], index: 1, kind: input, shape index: {}]   ;;  %s478_s2 = inlined_call_operand.vmem [shape: f32[2,128], index: 2, kind: output, shape index: {}]  }
   0x1   :  { %s15_s10 = sshll.u32 %s432_s9, 4  ;;  %s408_s13 = scalar_lea.hbm %s477_s1, 2816  ;;  %s16_s10 = int_to_ptr.vmem [resolvable:$true] %s15_s10 }
   0x2   :  { %p409_p0 = scmp.ne.s32.totalorder %s477_s1, %s408_s13  ;;  %p412_p1 = scmp.lt.u32.totalorder %s408_s13, %s477_s1 }
   0x4   :  { %p414_p2 = pnand %p412_p1, %p409_p0 }
   0x6   :  { %417 = shalt.err (!%p414_p2)
}
   0x7   :  { %s418_s18 = scalar_lea.vmem %s16_s10, 2816  ;;  %p423_p4 = scmp.lt.s32.totalorder %s16_s10, %s16_s10 }
   0x8   :  { %p419_p3 = scmp.ne.s32.totalorder %s16_s10, %s418_s18  ;;  %p424_p5 = scmp.lt.s32.totalorder %s418_s18, %s418_s18 }
   0xa   :  { %p425_p6 = por %p424_p5, %p423_p4 }
   0xc   :  { %p426_p7 = pnand %p425_p6, %p419_p3 }
   0xe   :  { %429 = shalt.err (!%p426_p7)
}
   0xf   :  { %s433_s19 = smov 128   ;;  %s434_s20 = smov 8  }
  0x10   :  { %21 = dma.hbm_to_vmem [thread:$0]  %s477_s1, 2816, %s16_s10, [#allocation3], %s433_s19, %s433_s19, %s434_s20  }
  0x11   :  { %430 = dma.done.wait [#allocation3], 2816  }
  0x12   :  { %431 = vsyncadd [#allocation3], 4294964480  ;;  %v435_v0 = vmov 0.0|0.0   ;;  %vm436_vm0 = vmmov 0   ;;  %v437_v1 = vmov 0.0   ;;  %v34_v2 = vld [vmem:[#allocation2 + $0x10] sm:$0xff]  ;;  %v281_v47 = vlaneseq }
  0x13   :  { %370 = vmatprep.subr.bf16.mxu1 %v435_v0  ;;  %325 = vmatprep.mubr.msk.f32.mxu1 %vm436_vm0, %v437_v1  ;;  %v35_v3 = vld [vmem:[#allocation2 + $0x18] sm:$0xff]  ;;  %v25_v4 = vld [vmem:[%s476_s0] sm:$0x3]  ;;  %v33_v7 = vld [vmem:[#allocation2 + $0x8] sm:$0xff]  ;;  %vm37_vm2 = vcmask 130048  }
  0x14   :  { %376 = vmatprep.subr.bf16.mxu0 %v435_v0  ;;  %367 = vmatprep.mubr.msk.f32.mxu0 %vm436_vm0, %v437_v1  ;;  %v371_v5 = vpack.c.bf16 %v35_v3, %v34_v2  ;;  %vm29_vm1 = vcmp.eq.s32.totalorder %v25_v4, 4294967295  ;;  %v32_v6 = vld [vmem:[#allocation2] sm:$0xff]  ;;  %v190_v8 = vld [vmem:[#allocation2 + $0x28] sm:$0xff]  ;;  %v191_v9 = vld [vmem:[#allocation2 + $0x30] sm:$0xff]  ;;  %vm26_vm3 = vcmp.eq.s32.totalorder %v25_v4, 1  ;;  %v282_v48 = vand.u32 127, %v281_v47 }
  0x15   :  { %v192_v10 = vld [vmem:[#allocation2 + $0x38] sm:$0xff]  ;;  %v193_v11 = vld [vmem:[#allocation2 + $0x40] sm:$0xff]  ;;  %v293_v12 = vsel %vm29_vm1, 1.0, %v437_v1  ;;  %v374_v13 = vpack.c.bf16 %v33_v7, %v32_v6  ;;  %v377_v14 = vpack.c.bf16 %v191_v9, %v190_v8  ;;  %v194_v16 = vld [vmem:[#allocation2 + $0x48] sm:$0xff]  ;;  %v292_v18 = vsel %vm26_vm3, 1.0, %v437_v1 }
  0x16   :  { %372 = vmatpush3.bf16.msra.mxu1 %v371_v5  ;;  %v380_v15 = vpack.c.bf16 %v193_v11, %v192_v10  ;;  %v195_v17 = vld [vmem:[#allocation2 + $0x50] sm:$0xff]  ;;  %v196_v20 = vld [vmem:[#allocation2 + $0x58] sm:$0xff]  ;;  %v197_v21 = vld [vmem:[#allocation2 + $0x60] sm:$0xff]  ;;  %vm283_vm4 = vcmp.eq.s32.totalorder %v282_v48, 16 }
  0x17   :  { %373 = vmatprep.subr.bf16.mxu1 %v435_v0  ;;  %378 = vmatpush3.bf16.msra.mxu0 %v377_v14  ;;  %v383_v19 = vpack.c.bf16 %v195_v17, %v194_v16  ;;  %v386_v22 = vpack.c.bf16 %v197_v21, %v196_v20  ;;  %v198_v23 = vld [vmem:[#allocation2 + $0x68] sm:$0xff]  ;;  %v199_v24 = vld [vmem:[#allocation2 + $0x70] sm:$0xff]  ;;  %v200_v26 = vld [vmem:[#allocation2 + $0x78] sm:$0xff] }
  0x18   :  { %379 = vmatprep.subr.bf16.mxu0 %v435_v0  ;;  %v389_v25 = vpack.c.bf16 %v199_v24, %v198_v23  ;;  %v201_v27 = vld [vmem:[#allocation2 + $0x80] sm:$0xff]  ;;  %v202_v29 = vld [vmem:[#allocation2 + $0x88] sm:$0xff]  ;;  %v203_v30 = vld [vmem:[#allocation2 + $0x90] sm:$0xff] }
  0x19   :  { %326 = vmatmul.mubr.msk.f32.vlgmr.msra.gmra.mrb[0].mxu1 %vm37_vm2, %v293_v12  ;;  %v392_v28 = vpack.c.bf16 %v201_v27, %v200_v26  ;;  %v395_v31 = vpack.c.bf16 %v203_v30, %v202_v29  ;;  %v204_v32 = vld [vmem:[#allocation2 + $0x98] sm:$0xff]  ;;  %v205_v33 = vld [vmem:[#allocation2 + $0xa0] sm:$0xff]  ;;  %v297_v43 = vld [vmem:[#allocation2 + $0xa8] ss:$0 sm:$0xff] }
  0x1a   :  { %375 = vmatpush3.bf16.msra.mxu1 %v374_v13  ;;  %332 = vmatprep.mubr.msk.f32.mxu1 %vm436_vm0, %v437_v1  ;;  %v398_v34 = vpack.c.bf16 %v205_v33, %v204_v32  ;;  %v296_v37 = vld [vmem:[#allocation2 + $0x20] ss:$0 sm:$0xff] }
  0x1b   :  { %381 = vmatpush3.bf16.msra.mxu0 %v380_v15 }
  0x1c   :  { %382 = vmatprep.subr.bf16.mxu0 %v435_v0 }
  0x1d   :  { %333 = vmatmul.mubr.msk.f32.vlgmr.msra.gmra.mrb[2].mxu1 %vm37_vm2, %v292_v18 }
  0x1f   :  { %384 = vmatpush3.bf16.msra.mxu0 %v383_v19 }
  0x20   :  { %385 = vmatprep.subr.bf16.mxu0 %v435_v0 }
  0x23   :  { %387 = vmatpush3.bf16.msra.mxu0 %v386_v22 }
  0x24   :  { %388 = vmatprep.subr.bf16.mxu0 %v435_v0 }
  0x27   :  { %390 = vmatpush3.bf16.msra.mxu0 %v389_v25 }
  0x28   :  { %391 = vmatprep.subr.bf16.mxu0 %v435_v0 }
  0x2b   :  { %393 = vmatpush3.bf16.msra.mxu0 %v392_v28 }
  0x2c   :  { %394 = vmatprep.subr.bf16.mxu0 %v435_v0 }
  0x2f   :  { %396 = vmatpush3.bf16.msra.mxu0 %v395_v31 }
  0x30   :  { %397 = vmatprep.subr.bf16.mxu0 %v435_v0 }
  0x33   :  { %399 = vmatpush3.bf16.msra.mxu0 %v398_v34 }
  0xec   :  { %v107_v35 = vpop.f32.mrb[0].mxu1 }
  0xed   :  { %v327_v36 = vpop.f32.mrb[1].mxu1 }
  0xf0   :  { %v180_v38 = vpop.f32.mrb[2].mxu1 }
  0xf1   :  { %v181_v39 = vadd.f32 %v180_v38, %v107_v35  ;;  %v334_v40 = vpop.f32.mrb[3].mxu1 }
  0xf3   :  { %v188_v41 = vadd.f32 %v296_v37, %v181_v39 }
  0xf5   :  { %v189_v42 = vmax.f32 %v188_v41, 0.0 }
  0xf7   :  { %368 = vmatmul.mubr.f32.vlgmr.msra.gmra.mrb[0].mxu0 %v189_v42 }
 0x1ca   :  { %v277_v44 = vpop.f32.mrb[0].mxu0 }
 0x1cb   :  { %v278_v45 = vadd.f32 %v297_v43, %v277_v44  ;;  %v369_v46 = vpop.f32.mrb[1].mxu0 }
 0x1cd   :  { %406 = vtanh.f32 %v278_v45 }
 0x1d7   :  { %v407_v49 = vpop.eup %406 }
 0x1d8   :  { %v285_v50 = vsel %vm283_vm4, %v407_v49, %v278_v45 }
 0x1d9   :  { %286 = vst [vmem:[%s478_s2] sm:$0x3] %v285_v50 }
 0x1da   :  { %291 = vsyncpa [#allocation3], 1 }

</bundles_post_ra>
